<compile_context>
chip_gen: v7x
topology: tpu7x:2x2x1
jax: 0.10.0
libtpu: 0.0.40
codegen_flags: <defaults>
</compile_context>

<pallas_src>
import math

import jax
import jax.numpy as jnp
from jax import lax
from jax.experimental import pallas as pl
from jax.experimental.pallas import tpu as pltpu

_INV_SQRT2 = 1.0 / math.sqrt(2.0)
_HIGHEST = lax.Precision.HIGHEST


def _gelu_exact(h):
    # Exact erf-based GELU (matches torch.nn.GELU default).
    return 0.5 * h * (1.0 + lax.erf(h * _INV_SQRT2))


def _excite(y, w1t, w2t):
    # y: (TB, C) f32 -> sigmoid(W2 @ gelu(W1 @ y)) : (TB, C) f32
    h = jnp.dot(y, w1t, preferred_element_type=jnp.float32, precision=_HIGHEST)
    h = _gelu_exact(h)
    s = jnp.dot(h, w2t, preferred_element_type=jnp.float32, precision=_HIGHEST)
    return jax.nn.sigmoid(s)


def se_kernel_ncl(x_ref, w1t_ref, w2t_ref, o_ref):
    """Lane-friendly path: block = (TB, C, L), L a multiple of 128."""
    x = x_ref[...]                                        # (TB, C, L), input dtype
    # Squeeze: mean over the sequence (lane) axis, accumulated in f32 only.
    y = jnp.mean(x, axis=-1, dtype=jnp.float32)           # (TB, C) f32
    s = _excite(y, w1t_ref[...], w2t_ref[...])            # (TB, C) f32
    # Scale in the input dtype; no fp32 copy of the slab is ever materialized.
    o_ref[...] = (x * s.astype(x.dtype)[:, :, None]).astype(o_ref.dtype)


def _make_flat_kernel(inv_l, slab_precision):
    def se_kernel_flat(x_ref, w1t_ref, w2t_ref, pool_ref, expand_ref, o_ref):
        """Lane-dense path: block = (TB, 1, C*L)."""
        xf = x_ref[:, 0, :]                                # (TB, C*L), input dtype
        # Squeeze: per-channel segment sum on the MXU (f32 accumulate), then 1/L.
        y = jnp.dot(xf, pool_ref[...], preferred_element_type=jnp.float32,
                    precision=slab_precision) * inv_l      # (TB, C) f32
        s = _excite(y, w1t_ref[...], w2t_ref[...])          # (TB, C) f32
        # Scale: broadcast s onto its C*L segments via a one-hot matmul (each
        # output lane selects exactly one s value), multiply in the input
        # dtype, and do a single lane-dense store of the slab.
        s_full = jnp.dot(s.astype(xf.dtype), expand_ref[...],
                         precision=slab_precision)          # (TB, C*L)
        o_ref[:, 0, :] = (xf * s_full).astype(o_ref.dtype)

    return se_kernel_flat


def _vmem_capacity_bytes():
    try:
        return int(pltpu.get_tpu_info().vmem_capacity_bytes)
    except Exception:
        return 64 << 20  # conservative (v7x per-TC VMEM)


def _pick_batch_tile(B, row_bytes, target_bytes=2 << 20):
    """Batch rows per grid step: ~2 MiB slabs, with a deep enough grid to
    pipeline (>= 8 steps when B allows it, >= 2 steps for v7x megacore)."""
    tb = max(1, target_bytes // max(1, row_bytes))
    if B >= 8:
        tb = min(tb, B // 8)
    elif B >= 2:
        tb = min(tb, B // 2)
    tb = min(tb, B)
    if tb >= 8:
        tb = (tb // 8) * 8                                  # MXU-friendly M
    return int(max(1, tb))


def se_forward(x, w1, w2):
    """x: (B, C, L); w1: (H, C) torch Linear layout; w2: (C, H)."""
    B, C, L = x.shape
    H = w1.shape[0]
    xdt = x.dtype
    itemsize = jnp.dtype(xdt).itemsize

    # Pre-transpose + cast the MLP weights once (resident across the grid).
    w1t = jnp.asarray(w1, dtype=jnp.float32).T              # (C, H)
    w2t = jnp.asarray(w2, dtype=jnp.float32).T               # (H, C)

    row_bytes = C * L * itemsize
    TB = _pick_batch_tile(B, row_bytes)
    grid = (pl.cdiv(B, TB),)

    lane_friendly = (L % 128 == 0)
    seg_mat_bytes = C * C * L * itemsize                      # one (C*L, C) matrix
    use_flat = (not lane_friendly) and (seg_mat_bytes <= (2 << 20))
    # Note: small L with very large C falls back to the NCL path (correct, but
    # with lane-sparse masked stores, since the segment matrices would not fit).

    weight_bytes = (w1t.size + w2t.size) * 4
    const_bytes = weight_bytes + (2 * seg_mat_bytes if use_flat else 0)
    tile_bytes = TB * row_bytes
    vmem_cap = _vmem_capacity_bytes()
    needed = 4 * tile_bytes + 2 * const_bytes                 # dbl-buffered slabs + consts
    vmem_limit = int(min(int(0.75 * vmem_cap), max(32 << 20, 2 * needed)))

    cost = pl.CostEstimate(
        flops=2 * B * C * L + 4 * B * C * H + (4 * B * C * C * L if use_flat else 0),
        transcendentals=B * (C + H),
        bytes_accessed=2 * B * C * L * itemsize + const_bytes,
    )
    cparams = pltpu.CompilerParams(
        dimension_semantics=("parallel",),
        vmem_limit_bytes=vmem_limit,
    )
    w1_spec = pl.BlockSpec((C, H), lambda b: (0, 0))
    w2_spec = pl.BlockSpec((H, C), lambda b: (0, 0))

    if use_flat:
        CL = C * L
        slab_prec = _HIGHEST if xdt == jnp.float32 else None
        eye_c = jnp.eye(C, dtype=xdt)
        pool_mat = jnp.repeat(eye_c, L, axis=0)               # (C*L, C) segment-sum
        expand_mat = jnp.repeat(eye_c, L, axis=1)             # (C, C*L) segment-bcast
        x_flat = x.reshape(B, 1, CL)                          # layout-preserving view
        out_flat = pl.pallas_call(
            _make_flat_kernel(1.0 / L, slab_prec),
            out_shape=jax.ShapeDtypeStruct((B, 1, CL), xdt),
            grid_spec=pltpu.PrefetchScalarGridSpec(
                num_scalar_prefetch=0,
                grid=grid,
                in_specs=[
                    pl.BlockSpec((TB, 1, CL), lambda b: (b, 0, 0)),
                    w1_spec,
                    w2_spec,
                    pl.BlockSpec((CL, C), lambda b: (0, 0)),
                    pl.BlockSpec((C, CL), lambda b: (0, 0)),
                ],
                out_specs=pl.BlockSpec((TB, 1, CL), lambda b: (b, 0, 0)),
            ),
            compiler_params=cparams,
            cost_estimate=cost,
        )(x_flat, w1t, w2t, pool_mat, expand_mat)
        return out_flat.reshape(B, C, L)

    return pl.pallas_call(
        se_kernel_ncl,
        out_shape=jax.ShapeDtypeStruct((B, C, L), xdt),
        grid_spec=pltpu.PrefetchScalarGridSpec(
            num_scalar_prefetch=0,
            grid=grid,
            in_specs=[
                pl.BlockSpec((TB, C, L), lambda b: (b, 0, 0)),
                w1_spec,
                w2_spec,
            ],
            out_specs=pl.BlockSpec((TB, C, L), lambda b: (b, 0, 0)),
        ),
        compiler_params=cparams,
        cost_estimate=cost,
    )(x, w1t, w2t)


def se_reference(x, w1, w2):
    xf = x.astype(jnp.float32)
    y = jnp.mean(xf, axis=-1)
    h = jnp.dot(y, w1.astype(jnp.float32).T, precision=_HIGHEST)
    h = _gelu_exact(h)
    s = jax.nn.sigmoid(jnp.dot(h, w2.astype(jnp.float32).T, precision=_HIGHEST))
    return (xf * s[:, :, None]).astype(x.dtype)


if __name__ == "__main__":
    # SE(inp=32, oup=8, expansion=0.25) -> hidden = int(32 * 0.25) = 8
    INP, EXPANSION = 32, 0.25
    HID = int(INP * EXPANSION)        # 8
    B, C, L = 2, 8, 16                # C == oup; small L -> lane-dense flat path

    key = jax.random.PRNGKey(0)
    kx, k1, k2, kx2 = jax.random.split(key, 4)

    x = jax.random.normal(kx, (B, C, L), dtype=jnp.float32)
    # torch Linear weights are (out_features, in_features); no biases.
    w1 = jax.random.normal(k1, (HID, C), dtype=jnp.float32) * 0.1
    w2 = jax.random.normal(k2, (C, HID), dtype=jnp.float32) * 0.1

    out = jax.block_until_ready(se_forward(x, w1, w2))
    ref = jax.block_until_ready(se_reference(x, w1, w2))
    assert out.shape == (B, C, L)
    assert jnp.max(jnp.abs(out - ref)) < 1e-4

    # Second config exercises the lane-friendly NCL path (L a multiple of 128).
    B2, L2 = 4, 128
    x2 = jax.random.normal(kx2, (B2, C, L2), dtype=jnp.float32)
    out2 = jax.block_until_ready(se_forward(x2, w1, w2))
    ref2 = jax.block_until_ready(se_reference(x2, w1, w2))
    assert out2.shape == (B2, C, L2)
    assert jnp.max(jnp.abs(out2 - ref2)) < 1e-4

    print("KERNEL_OK")
</pallas_src>

<mosaic_0001>
module attributes {stable_mosaic.version = 11 : i64} {
  func.func @se_kernel_flat(%arg0: i32, %arg1: memref<1x1x128xf32, #tpu.memory_space<vmem>>, %arg2: memref<8x8xf32, #tpu.memory_space<vmem>>, %arg3: memref<8x8xf32, #tpu.memory_space<vmem>>, %arg4: memref<128x8xf32, #tpu.memory_space<vmem>>, %arg5: memref<8x128xf32, #tpu.memory_space<vmem>>, %arg6: memref<1x1x128xf32, #tpu.memory_space<vmem>>) attributes {dimension_semantics = [#tpu.dimension_semantics<parallel>], iteration_bounds = array<i64: 2>, scalar_prefetch = 0 : i64, scratch_operands = 0 : i64, tpu.core_type = #tpu.core_type<tc>, window_params = [{transform_indices = @transform_0, window_bounds = array<i64: 1, 1, 128>}, {pipeline_mode = #tpu.pipeline_mode<synchronous>, transform_indices = @transform_1, window_bounds = array<i64: 8, 8>}, {pipeline_mode = #tpu.pipeline_mode<synchronous>, transform_indices = @transform_2, window_bounds = array<i64: 8, 8>}, {pipeline_mode = #tpu.pipeline_mode<synchronous>, transform_indices = @transform_3, window_bounds = array<i64: 128, 8>}, {pipeline_mode = #tpu.pipeline_mode<synchronous>, transform_indices = @transform_4, window_bounds = array<i64: 8, 128>}, {transform_indices = @transform_5, window_bounds = array<i64: 1, 1, 128>}]} {
    %c0 = arith.constant 0 : index
    %c0_0 = arith.constant 0 : index
    %c0_1 = arith.constant 0 : index
    %0 = vector.load %arg1[%c0, %c0_0, %c0_1] : memref<1x1x128xf32, #tpu.memory_space<vmem>>, vector<1x1x128xf32>
    %1 = vector.shape_cast %0 : vector<1x1x128xf32> to vector<1x128xf32>
    %c0_2 = arith.constant 0 : index
    %c0_3 = arith.constant 0 : index
    %2 = vector.load %arg4[%c0_2, %c0_3] : memref<128x8xf32, #tpu.memory_space<vmem>>, vector<128x8xf32>
    %cst = arith.constant dense<0.000000e+00> : vector<1x8xf32>
    %3 = tpu.matmul %1, %2, %cst {dimension_numbers = #tpu.dot_dimension_numbers<[1], [0], [0], [1], [0, 0, 1, 1], [], []>, precision = #tpu.contract_precision<fp32>} : vector<1x128xf32>, vector<128x8xf32>, vector<1x8xf32> -> vector<1x8xf32>
    %cst_4 = arith.constant 6.250000e-02 : f32
    %4 = vector.broadcast %cst_4 : f32 to vector<1x8xf32>
    %5 = arith.mulf %3, %4 : vector<1x8xf32>
    %c0_5 = arith.constant 0 : index
    %c0_6 = arith.constant 0 : index
    %6 = vector.load %arg2[%c0_5, %c0_6] : memref<8x8xf32, #tpu.memory_space<vmem>>, vector<8x8xf32>
    %c0_7 = arith.constant 0 : index
    %c0_8 = arith.constant 0 : index
    %7 = vector.load %arg3[%c0_7, %c0_8] : memref<8x8xf32, #tpu.memory_space<vmem>>, vector<8x8xf32>
    %cst_9 = arith.constant dense<0.000000e+00> : vector<1x8xf32>
    %8 = tpu.matmul %5, %6, %cst_9 {dimension_numbers = #tpu.dot_dimension_numbers<[1], [0], [0], [1], [0, 0, 1, 1], [], []>, precision = #tpu.contract_precision<fp32>} : vector<1x8xf32>, vector<8x8xf32>, vector<1x8xf32> -> vector<1x8xf32>
    %cst_10 = arith.constant 5.000000e-01 : f32
    %9 = vector.broadcast %cst_10 : f32 to vector<1x8xf32>
    %10 = arith.mulf %9, %8 : vector<1x8xf32>
    %cst_11 = arith.constant 0.707106769 : f32
    %11 = vector.broadcast %cst_11 : f32 to vector<1x8xf32>
    %12 = arith.mulf %8, %11 : vector<1x8xf32>
    %13 = math.erf %12 : vector<1x8xf32>
    %cst_12 = arith.constant 1.000000e+00 : f32
    %14 = vector.broadcast %cst_12 : f32 to vector<1x8xf32>
    %15 = arith.addf %14, %13 : vector<1x8xf32>
    %16 = arith.mulf %10, %15 : vector<1x8xf32>
    %cst_13 = arith.constant dense<0.000000e+00> : vector<1x8xf32>
    %17 = tpu.matmul %16, %7, %cst_13 {dimension_numbers = #tpu.dot_dimension_numbers<[1], [0], [0], [1], [0, 0, 1, 1], [], []>, precision = #tpu.contract_precision<fp32>} : vector<1x8xf32>, vector<8x8xf32>, vector<1x8xf32> -> vector<1x8xf32>
    %18 = arith.negf %17 : vector<1x8xf32>
    %19 = math.exp %18 : vector<1x8xf32>
    %cst_14 = arith.constant 1.000000e+00 : f32
    %20 = vector.broadcast %cst_14 : f32 to vector<1x8xf32>
    %21 = arith.addf %20, %19 : vector<1x8xf32>
    %22 = arith.divf %20, %21 : vector<1x8xf32>
    %c0_15 = arith.constant 0 : index
    %c0_16 = arith.constant 0 : index
    %23 = vector.load %arg5[%c0_15, %c0_16] : memref<8x128xf32, #tpu.memory_space<vmem>>, vector<8x128xf32>
    %cst_17 = arith.constant dense<0.000000e+00> : vector<1x128xf32>
    %24 = tpu.matmul %22, %23, %cst_17 {dimension_numbers = #tpu.dot_dimension_numbers<[1], [0], [0], [1], [0, 0, 1, 1], [], []>, precision = #tpu.contract_precision<fp32>} : vector<1x8xf32>, vector<8x128xf32>, vector<1x128xf32> -> vector<1x128xf32>
    %25 = arith.mulf %1, %24 : vector<1x128xf32>
    %c0_18 = arith.constant 0 : index
    %c0_19 = arith.constant 0 : index
    %c0_20 = arith.constant 0 : index
    %26 = vector.load %arg6[%c0_18, %c0_19, %c0_20] : memref<1x1x128xf32, #tpu.memory_space<vmem>>, vector<1x1x128xf32>
    %27 = vector.shape_cast %26 : vector<1x1x128xf32> to vector<1x128xf32>
    %28 = vector.shape_cast %25 : vector<1x128xf32> to vector<1x1x128xf32>
    tpu.vector_store %arg6[%c0_18, %c0_19, %c0_20], %28 {strides = array<i32>} : memref<1x1x128xf32, #tpu.memory_space<vmem>>, vector<1x1x128xf32>,
    return
  }
  func.func @transform_0(%arg0: i32) -> (i32, i32, i32) {
    %c0_i32 = arith.constant 0 : i32
    %c0_i32_0 = arith.constant 0 : i32
    %c0_i32_1 = arith.constant 0 : i32
    return %arg0, %c0_i32, %c0_i32_0 : i32, i32, i32
  }
  func.func @transform_1(%arg0: i32) -> (i32, i32) {
    %c0_i32 = arith.constant 0 : i32
    %c0_i32_0 = arith.constant 0 : i32
    %c0_i32_1 = arith.constant 0 : i32
    return %c0_i32, %c0_i32_0 : i32, i32
  }
  func.func @transform_2(%arg0: i32) -> (i32, i32) {
    %c0_i32 = arith.constant 0 : i32
    %c0_i32_0 = arith.constant 0 : i32
    %c0_i32_1 = arith.constant 0 : i32
    return %c0_i32, %c0_i32_0 : i32, i32
  }
  func.func @transform_3(%arg0: i32) -> (i32, i32) {
    %c0_i32 = arith.constant 0 : i32
    %c0_i32_0 = arith.constant 0 : i32
    %c0_i32_1 = arith.constant 0 : i32
    return %c0_i32, %c0_i32_0 : i32, i32
  }
  func.func @transform_4(%arg0: i32) -> (i32, i32) {
    %c0_i32 = arith.constant 0 : i32
    %c0_i32_0 = arith.constant 0 : i32
    %c0_i32_1 = arith.constant 0 : i32
    return %c0_i32, %c0_i32_0 : i32, i32
  }
  func.func @transform_5(%arg0: i32) -> (i32, i32, i32) {
    %c0_i32 = arith.constant 0 : i32
    %c0_i32_0 = arith.constant 0 : i32
    %c0_i32_1 = arith.constant 0 : i32
    return %arg0, %c0_i32, %c0_i32_0 : i32, i32, i32
  }
}

</mosaic_0001>

<bundles_post_ra>
// kernel: tpu_custom_call.1
= control target key start
LH: loop header
LB: loop body
LE: loop exit
PB: predicated region body
PF: predicated region fallthrough
CT: control target
= control target key end

     0   :  { %10 = vsyncpa [#allocation3], 0  ;;  %s3548_s0 = inlined_call_operand.vmem [shape: f32[2,1,128], index: 0, kind: input, shape index: {}]   ;;  %s3549_s1 = inlined_call_operand.vmem [shape: f32[8,8], index: 1, kind: input, shape index: {}]   ;;  %s3550_s2 = inlined_call_operand.vmem [shape: f32[8,8], index: 2, kind: input, shape index: {}]   ;;  %s3551_s3 = inlined_call_operand.vmem [shape: f32[128,8], index: 3, kind: input, shape index: {}]   ;;  %s3552_s4 = inlined_call_operand.vmem [shape: f32[8,128], index: 4, kind: input, shape index: {}]   ;;  %s3553_s5 = inlined_call_operand.hbm [shape: f32[2,1,128], index: 5, kind: output, shape index: {}]  }
   0x1   :  { %12 = vsyncpa [#allocation3 + $0x1], 0  ;;  %s3078_s18 = smov 0   ;;  %s3080_s19 = smov 0  }
   0x2   :  { %s3082_s20 = smov 0   ;;  %s3084_s21 = smov 0  }
   0x3 LB: > { %s3099_s22 = sadd.s32 4294967295, %s3042_s21   ;;  %s2304_s23 = sadd.s32 4294967294, %s3042_s21   ;;  %s3042_s21 = sphi %s3084_s21, %s3559_s21   ;;  %s3038_s20 = sphi %s3082_s20, %s3558_s20   ;;  %s3034_s19 = sphi %s3080_s19, %s3557_s19   ;;  %s3030_s18 = sphi %s3078_s18, %s3556_s18  }
   0x4   : > { %s3103_s24 = sadd.s32 1, %s3042_s21   ;;  %s135_s25 = sadd.s32 1, %s3038_s20 }
   0x5   : > { %s132_s26 = ssub.s32 %s3042_s21, %s3103_s24  ;;  %p145_p0 = scmp.ne.s32.totalorder %s3038_s20, %s3034_s19 }
   0x6   : > { %p133_p1 = scmp.eq.s32.totalorder %s132_s26, 0  ;;  %p146_p2 = scmp.eq.s32.totalorder %s3099_s22, 1 }
   0x7   : > { %p151_p3 = scmp.ne.s32.totalorder %s3034_s19, %s3030_s18  ;;  %p152_p4 = scmp.eq.s32.totalorder %s2304_s23, 1 }
   0x8   : > { %s3114_s27 = scalar_select %p133_p1, %s3038_s20, %s135_s25  }
   0x9   : > { %p3116_p5 = por %p146_p2, %p145_p0  ;;  %p3120_p6 = por %p152_p4, %p151_p3 }
   0xa   : > { %p2307_p7 = scmp.ge.s32.totalorder %s3042_s21, 1  ;;  %p188_p8 = scmp.lt.s32.totalorder %s3042_s21, 3 }
   0xc   : > { %p189_p9 = pnand %p2307_p7, %p188_p8 }
   0xd   : > { %v217_v0 = vld [vmem:[%s3551_s3] sm:$0xff] (!%p189_p9)  ;;  %v218_v1 = vld [vmem:[%s3551_s3 + $0x8] sm:$0xff] (!%p189_p9)  ;;  %v219_v2 = vld [vmem:[%s3551_s3 + $0x10] sm:$0xff] (!%p189_p9)  ;;  %v3044_v3 = vmov (!%p189_p9), 0.0|0.0   ;;  %vm3045_vm0 = vmmov (!%p189_p9), 0   ;;  %v3046_v12 = vmov (!%p189_p9), 0.0  }
   0xe   : > { %192 = sbr.rel (%p189_p9) target bundleno = 1197 (0x4ad), region = 40  ;;  %2798 = vmatprep.subr.bf16.mxu0 (!%p189_p9), %v3044_v3  ;;  %v234_v4 = vand.u32 (!%p189_p9), 4294901760, %v217_v0  ;;  %v237_v5 = vand.u32 (!%p189_p9), 4294901760, %v218_v1  ;;  %v220_v6 = vld [vmem:[%s3551_s3 + $0x18] sm:$0xff] (!%p189_p9)  ;;  %v240_v7 = vand.u32 (!%p189_p9), 4294901760, %v219_v2  ;;  %v221_v8 = vld [vmem:[%s3551_s3 + $0x20] sm:$0xff] (!%p189_p9)  ;;  %2750 = vmatprep.subr.bf16.mxu1 (!%p189_p9), %v3044_v3 }
   0xf   : > { %v222_v9 = vld [vmem:[%s3551_s3 + $0x28] sm:$0xff] (!%p189_p9)  ;;  %v243_v10 = vand.u32 (!%p189_p9), 4294901760, %v220_v6  ;;  %v246_v11 = vand.u32 (!%p189_p9), 4294901760, %v221_v8  ;;  %2552 = vmatprep.mubr.msk.f32.mxu0 (!%p189_p9), %vm3045_vm0, %v3046_v12  ;;  %2482 = vmatprep.mubr.msk.f32.mxu1 (!%p189_p9), %vm3045_vm0, %v3046_v12  ;;  %v223_v17 = vld [vmem:[%s3551_s3 + $0x30] sm:$0xff] (!%p189_p9)  ;;  %v224_v19 = vld [vmem:[%s3551_s3 + $0x38] sm:$0xff] (!%p189_p9)  ;;  %p213_p10 = scmp.lt.s32.totalorder (!%p189_p9), %s3099_s22, 1 }
  0x10   : > { %v3150_v13 = vsub.f32 (!%p189_p9), %v217_v0, %v234_v4  ;;  %v3152_v14 = vsub.f32 (!%p189_p9), %v218_v1, %v237_v5  ;;  %v3154_v15 = vsub.f32 (!%p189_p9), %v219_v2, %v240_v7  ;;  %v249_v16 = vand.u32 (!%p189_p9), 4294901760, %v222_v9  ;;  %v225_v26 = vld [vmem:[%s3551_s3 + $0x40] sm:$0xff] (!%p189_p9)  ;;  %v226_v27 = vld [vmem:[%s3551_s3 + $0x48] sm:$0xff] (!%p189_p9)  ;;  %v227_v34 = vld [vmem:[%s3551_s3 + $0x50] sm:$0xff] (!%p189_p9)  ;;  %s2309_s16 = sshll.u32 (!%p189_p9), %s3099_s22, 4 }
  0x11   : > { %v3159_v18 = vsub.f32 (!%p189_p9), %v220_v6, %v243_v10  ;;  %v252_v21 = vand.u32 (!%p189_p9), 4294901760, %v223_v17  ;;  %v3168_v23 = vsub.f32 (!%p189_p9), %v221_v8, %v246_v11  ;;  %v255_v25 = vand.u32 (!%p189_p9), 4294901760, %v224_v19  ;;  %v228_v35 = vld [vmem:[%s3551_s3 + $0x58] sm:$0xff] (!%p189_p9)  ;;  %v229_v42 = vld [vmem:[%s3551_s3 + $0x60] sm:$0xff] (!%p189_p9)  ;;  %v230_v43 = vld [vmem:[%s3551_s3 + $0x68] sm:$0xff] (!%p189_p9)  ;;  %s3506_s30 = scalar_lea.hbm (!%p189_p9), %s3553_s5, %s2309_s16 }
  0x12   : > { %v2799_v20 = vpack.c.bf16 (!%p189_p9), %v3152_v14, %v3150_v13  ;;  %v3170_v24 = vsub.f32 (!%p189_p9), %v222_v9, %v249_v16  ;;  %v3181_v29 = vpack.c.bf16 (!%p189_p9), %v237_v5, %v234_v4  ;;  %v258_v32 = vand.u32 (!%p189_p9), 4294901760, %v225_v26  ;;  %v231_v50 = vld [vmem:[%s3551_s3 + $0x70] sm:$0xff] (!%p189_p9)  ;;  %v232_v51 = vld [vmem:[%s3551_s3 + $0x78] sm:$0xff] (!%p189_p9) }
  0x13   : > { %v2802_v22 = vpack.c.bf16 (!%p189_p9), %v3159_v18, %v3154_v15  ;;  %v3179_v28 = vsub.f32 (!%p189_p9), %v223_v17, %v252_v21  ;;  %v3185_v31 = vsub.f32 (!%p189_p9), %v224_v19, %v255_v25  ;;  %v261_v33 = vand.u32 (!%p189_p9), 4294901760, %v226_v27 }
  0x14   : > { %2800 = vmatpush3.bf16.msra.mxu0 (!%p189_p9), %v2799_v20  ;;  %v2805_v30 = vpack.c.bf16 (!%p189_p9), %v3170_v24, %v3168_v23  ;;  %2752 = vmatpush3.bf16.msra.mxu1 (!%p189_p9), %v3181_v29  ;;  %v3196_v36 = vpack.c.bf16 (!%p189_p9), %v243_v10, %v240_v7  ;;  %v264_v37 = vand.u32 (!%p189_p9), 4294901760, %v227_v34  ;;  %v3201_v39 = vsub.f32 (!%p189_p9), %v225_v26, %v258_v32 }
  0x15   : > { %2801 = vmatprep.subr.bf16.mxu0 %v3044_v3  ;;  %2753 = vmatprep.subr.bf16.mxu1 %v3044_v3  ;;  %v2808_v38 = vpack.c.bf16 %v3185_v31, %v3179_v28  ;;  %v3203_v40 = vsub.f32 %v226_v27, %v261_v33  ;;  %v267_v41 = vand.u32 4294901760, %v228_v35  ;;  %s214_s15 = scalar_select %p213_p10, %s3099_s22, 1  ;;  %v3214_v44 = vpack.c.bf16 %v249_v16, %v246_v11 }
  0x16   : > { %v270_v45 = vand.u32 4294901760, %v229_v42  ;;  %v3219_v47 = vsub.f32 %v227_v34, %v264_v37  ;;  %v273_v49 = vand.u32 4294901760, %v230_v43  ;;  %v3234_v52 = vpack.c.bf16 %v255_v25, %v252_v21  ;;  %s3047_s22 = smov [#allocation2]  }
  0x17   : > { %v2811_v46 = vpack.c.bf16 %v3203_v40, %v3201_v39  ;;  %v3221_v48 = vsub.f32 %v228_v35, %v267_v41  ;;  %s215_s6 = scalar_lea.vmem %s3548_s0, %s214_s15  ;;  %v276_v53 = vand.u32 4294901760, %v231_v50  ;;  %v279_v58 = vand.u32 4294901760, %v232_v51  ;;  %s211_s15 = sand.u32 1, %s3034_s19  }
  0x18   : > { %2803 = vmatpush3.bf16.msra.mxu0 %v2802_v22  ;;  %2755 = vmatpush3.bf16.msra.mxu1 %v3196_v36  ;;  %v3237_v54 = vld [vmem:[%s215_s6] sm:$0x1]  ;;  %v3241_v56 = vsub.f32 %v229_v42, %v270_v45  ;;  %v3243_v57 = vsub.f32 %v230_v43, %v273_v49  ;;  %v3247_v59 = vpack.c.bf16 %v261_v33, %v258_v32  ;;  %v327_v0 = vand.u32 4294901760, %v3150_v13  ;;  %s212_s17 = scalar_lea.vmem [#allocation2], %s211_s15  ;;  %s2240_s6 = scalar_lea.sflag [#allocation3], %s211_s15 }
  0x19   : > { %2804 = vmatprep.subr.bf16.mxu0 %v3044_v3  ;;  %2756 = vmatprep.subr.bf16.mxu1 %v3044_v3  ;;  %v2814_v55 = vpack.c.bf16 %v3221_v48, %v3219_v47  ;;  %v3250_v60 = vand.u32 4294901760, %v3237_v54  ;;  %v3255_v62 = vsub.f32 %v231_v50, %v276_v53  ;;  %v3257_v63 = vsub.f32 %v232_v51, %v279_v58  ;;  %s2252_s23 = sshll.u32 %s212_s17, 4  ;;  %s2984_s8 = sshll.u32 %s3047_s22, 4  ;;  %s3508_s23 = int_to_ptr.vmem [resolvable:$true] %s2252_s23  ;;  %s2985_s8 = int_to_ptr.vmem [resolvable:$false] %s2984_s8 }
  0x1a   : > { %v2817_v61 = vpack.c.bf16 %v3243_v57, %v3241_v56  ;;  %v334_v1 = vand.u32 4294901760, %v3152_v14  ;;  %v3263_v2 = vpack.c.bf16 %v267_v41, %v264_v37  ;;  %v341_v7 = vand.u32 4294901760, %v3154_v15  ;;  %s2980_s7 = scalar_lea.vmem %s3508_s23, 16  ;;  %s2986_s9 = scalar_lea.vmem %s2985_s8, 32 }
  0x1b   : > { %v3267_v4 = vsub.f32 %v3237_v54, %v3250_v60  ;;  %v2820_v5 = vpack.c.bf16 %v3257_v63, %v3255_v62  ;;  %v3276_v8 = vpack.c.bf16 %v273_v49, %v270_v45  ;;  %v328_v9 = vsub.f32 %v3150_v13, %v327_v0  ;;  %p2981_p11 = scmp.ne.s32.totalorder %s3508_s23, %s2980_s7  ;;  %p2987_p0 = scmp.lt.s32.totalorder %s3508_s23, %s2985_s8 }
  0x1c   : > { %2806 = vmatpush3.bf16.msra.mxu0 %v2805_v30  ;;  %2758 = vmatpush3.bf16.msra.mxu1 %v3214_v44  ;;  %v335_v10 = vsub.f32 %v3152_v14, %v334_v1  ;;  %v348_v11 = vand.u32 4294901760, %v3159_v18  ;;  %v3286_v16 = vpack.c.bf16 %v279_v58, %v276_v53  ;;  %v355_v19 = vand.u32 4294901760, %v3168_v23  ;;  %p2988_p1 = scmp.lt.s32.totalorder %s2986_s9, %s2980_s7 }
  0x1d   : > { %2807 = vmatprep.subr.bf16.mxu0 %v3044_v3  ;;  %2759 = vmatprep.subr.bf16.mxu1 %v3044_v3  ;;  %v316_v6 = vand.u32 4294901760, %v3267_v4  ;;  %v362_v20 = vand.u32 4294901760, %v3170_v24  ;;  %v329_v21 = vand.u32 4294901760, %v328_v9  ;;  %v342_v25 = vsub.f32 %v3154_v15, %v341_v7  ;;  %p2982_p12 = pnand %p2981_p11, %p3116_p5 }
  0x1e   : > { %v336_v22 = vand.u32 4294901760, %v335_v10  ;;  %v349_v26 = vsub.f32 %v3159_v18, %v348_v11  ;;  %v356_v30 = vsub.f32 %v3168_v23, %v355_v19  ;;  %v369_v33 = vand.u32 4294901760, %v3179_v28  ;;  %p2989_p2 = por %p2988_p1, %p2987_p0 }
  0x1f   : > { %v317_v17 = vsub.f32 %v3267_v4, %v316_v6  ;;  %v363_v32 = vsub.f32 %v3170_v24, %v362_v20  ;;  %v343_v35 = vand.u32 4294901760, %v342_v25  ;;  %v383_v49 = vand.u32 4294901760, %v3201_v39  ;;  %p2983_p13 = pneg %p2982_p12 }
  0x20   : > { %2809 = vmatpush3.bf16.msra.mxu0 %v2808_v38  ;;  %2761 = vmatpush3.bf16.msra.mxu1 %v3234_v52  ;;  %v2775_v34 = vpack.c.bf16 %v336_v22, %v329_v21  ;;  %v350_v37 = vand.u32 4294901760, %v349_v26  ;;  %v376_v38 = vand.u32 4294901760, %v3185_v31  ;;  %v357_v41 = vand.u32 4294901760, %v356_v30 }
  0x21   : > { %2810 = vmatprep.subr.bf16.mxu0 %v3044_v3  ;;  %2762 = vmatprep.subr.bf16.mxu1 %v3044_v3  ;;  %v318_v27 = vand.u32 4294901760, %v317_v17  ;;  %v364_v42 = vand.u32 4294901760, %v363_v32  ;;  %v370_v43 = vsub.f32 %v3179_v28, %v369_v33  ;;  %v390_v50 = vand.u32 4294901760, %v3203_v40  ;;  %v875_v28 = vld [vmem:[%s3549_s1] sm:$0xff]  ;;  %p2990_p3 = pnand %p2989_p2, %p2983_p13 }
  0x22   : > { %v2778_v45 = vpack.c.bf16 %v350_v37, %v343_v35  ;;  %v404_v9 = vand.u32 4294901760, %v3221_v48  ;;  %v411_v17 = vand.u32 4294901760, %v3241_v56  ;;  %v418_v21 = vand.u32 4294901760, %v3243_v57 }
  0x23   : > { %v2781_v51 = vpack.c.bf16 %v364_v42, %v357_v41  ;;  %v371_v53 = vand.u32 4294901760, %v370_v43  ;;  %v432_v42 = vand.u32 4294901760, %v3257_v63  ;;  %v2853_v13 = vpack.c.bf16 %v362_v20, %v355_v19 }
  0x24   : > { %2812 = vmatpush3.bf16.msra.mxu0 %v2811_v46  ;;  %2764 = vmatpush3.bf16.msra.mxu1 %v3247_v59  ;;  %v377_v46 = vsub.f32 %v3185_v31, %v376_v38  ;;  %v412_v32 = vsub.f32 %v3241_v56, %v411_v17  ;;  %v419_v41 = vsub.f32 %v3243_v57, %v418_v21  ;;  %vm877_vm1 = vcmask 64512  }
  0x25   : > { %2813 = vmatprep.subr.bf16.mxu0 %v3044_v3  ;;  %2765 = vmatprep.subr.bf16.mxu1 %v3044_v3  ;;  %v2856_v14 = vpack.c.bf16 %v376_v38, %v369_v33  ;;  %v2859_v15 = vpack.c.bf16 %v390_v50, %v383_v49  ;;  %v2865_v23 = vpack.c.bf16 %v418_v21, %v411_v17 }
  0x26   : > { %v378_v58 = vand.u32 4294901760, %v377_v46  ;;  %v413_v46 = vand.u32 4294901760, %v412_v32 }
  0x28   : > { %2815 = vmatpush3.bf16.msra.mxu0 %v2814_v55  ;;  %2767 = vmatpush3.bf16.msra.mxu1 %v3263_v2  ;;  %v397_v55 = vand.u32 4294901760, %v3219_v47  ;;  %v2784_v22 = vpack.c.bf16 %v378_v58, %v371_v53  ;;  %v433_v53 = vsub.f32 %v3257_v63, %v432_v42 }
  0x29   : > { %2816 = vmatprep.subr.bf16.mxu0 %v3044_v3  ;;  %2768 = vmatprep.subr.bf16.mxu1 %v3044_v3 }
  0x2a   : > { %v398_v10 = vsub.f32 %v3219_v47, %v397_v55  ;;  %v2862_v18 = vpack.c.bf16 %v404_v9, %v397_v55 }
  0x2c   : > { %2818 = vmatpush3.bf16.msra.mxu0 %v2817_v61  ;;  %2770 = vmatpush3.bf16.msra.mxu1 %v3276_v8  ;;  %v384_v61 = vsub.f32 %v3201_v39, %v383_v49  ;;  %v399_v30 = vand.u32 4294901760, %v398_v10  ;;  %v2850_v10 = vpack.c.bf16 %v348_v11, %v341_v7 }
  0x2d   : > { %2819 = vmatprep.subr.bf16.mxu0 %v3044_v3  ;;  %2771 = vmatprep.subr.bf16.mxu1 %v3044_v3 }
  0x2e   : > { %v385_v25 = vand.u32 4294901760, %v384_v61 }
  0x30   : > { %2821 = vmatpush3.bf16.msra.mxu0 %v2820_v5  ;;  %2773 = vmatpush3.bf16.msra.mxu1 %v3286_v16  ;;  %v391_v5 = vsub.f32 %v3203_v40, %v390_v50 }
  0x31   : > { %2822 = vmatprep.subr.bf16.mxu0 %v3044_v3  ;;  %2774 = vmatprep.subr.bf16.mxu1 %v3044_v3 }
  0x32   : > { %v392_v26 = vand.u32 4294901760, %v391_v5  ;;  %v434_v5 = vand.u32 4294901760, %v433_v53 }
  0x33   : > { %2553 = vmatmul.mubr.f32.vlgmr.msra.gmra.mrb[0].mxu0 %v3267_v4  ;;  %2483 = vmatmul.mubr.f32.vlgmr.msra.gmra.mrb[0].mxu1 %v318_v27  ;;  %v405_v27 = vsub.f32 %v3221_v48, %v404_v9  ;;  %v876_v4 = vld [vmem:[%s3550_s2] sm:$0xff] }
  0x34   : > { %2824 = vmatpush3.bf16.msra.mxu0 %v3181_v29  ;;  %2587 = vmatprep.mubr.msk.f32.mxu0 %vm3045_vm0, %v3046_v12  ;;  %v2787_v35 = vpack.c.bf16 %v392_v26, %v385_v25 }
  0x35   : > { %2825 = vmatprep.subr.bf16.mxu0 %v3044_v3  ;;  %2776 = vmatpush3.bf16.msra.mxu1 %v2775_v34  ;;  %v425_v34 = vand.u32 4294901760, %v3255_v62  ;;  %v406_v37 = vand.u32 4294901760, %v405_v27 }
  0x36   : > { %2777 = vmatprep.subr.bf16.mxu1 %v3044_v3  ;;  %2517 = vmatprep.mubr.msk.f32.mxu1 %vm3045_vm0, %v3046_v12 }
  0x37   : > { %v426_v43 = vsub.f32 %v3255_v62, %v425_v34  ;;  %v2847_v62 = vpack.c.bf16 %v334_v1, %v327_v0  ;;  %v2868_v24 = vpack.c.bf16 %v432_v42, %v425_v34  ;;  %v1787_v34 = vld [vmem:[%s3552_s4] sm:$0xff] }
  0x38   : > { %2827 = vmatpush3.bf16.msra.mxu0 %v3196_v36 }
  0x39   : > { %2828 = vmatprep.subr.bf16.mxu0 %v3044_v3  ;;  %2779 = vmatpush3.bf16.msra.mxu1 %v2778_v45  ;;  %v2790_v45 = vpack.c.bf16 %v406_v37, %v399_v30  ;;  %v427_v61 = vand.u32 4294901760, %v426_v43 }
  0x3a   : > { %2780 = vmatprep.subr.bf16.mxu1 %v3044_v3 }
  0x3b   : > { %v2796_v63 = vpack.c.bf16 %v434_v5, %v427_v61 }
  0x3c   : > { %2830 = vmatpush3.bf16.msra.mxu0 %v3214_v44 }
  0x3d   : > { %2831 = vmatprep.subr.bf16.mxu0 %v3044_v3  ;;  %2782 = vmatpush3.bf16.msra.mxu1 %v2781_v51  ;;  %v420_v51 = vand.u32 4294901760, %v419_v41 }
  0x3e   : > { %2783 = vmatprep.subr.bf16.mxu1 %v3044_v3 }
  0x3f   : > { %v2793_v58 = vpack.c.bf16 %v420_v51, %v413_v46 }
  0x40   : > { %2833 = vmatpush3.bf16.msra.mxu0 %v3234_v52 }
  0x41   : > { %2834 = vmatprep.subr.bf16.mxu0 %v3044_v3  ;;  %2785 = vmatpush3.bf16.msra.mxu1 %v2784_v22 }
  0x42   : > { %2786 = vmatprep.subr.bf16.mxu1 %v3044_v3 }
  0x44   : > { %2836 = vmatpush3.bf16.msra.mxu0 %v3247_v59 }
  0x45   : > { %2837 = vmatprep.subr.bf16.mxu0 %v3044_v3  ;;  %2788 = vmatpush3.bf16.msra.mxu1 %v2787_v35  ;;  %v1792_v35 = vand.u32 4294901760, %v1787_v34 }
  0x46   : > { %2789 = vmatprep.subr.bf16.mxu1 %v3044_v3 }
  0x47   : > { %v1869_v46 = vsub.f32 %v1787_v34, %v1792_v35 }
  0x48   : > { %2839 = vmatpush3.bf16.msra.mxu0 %v3263_v2 }
  0x49   : > { %2840 = vmatprep.subr.bf16.mxu0 %v3044_v3  ;;  %2791 = vmatpush3.bf16.msra.mxu1 %v2790_v45 }
  0x4a   : > { %2792 = vmatprep.subr.bf16.mxu1 %v3044_v3 }
  0x4c   : > { %2842 = vmatpush3.bf16.msra.mxu0 %v3276_v8 }
  0x4d   : > { %2843 = vmatprep.subr.bf16.mxu0 %v3044_v3  ;;  %2794 = vmatpush3.bf16.msra.mxu1 %v2793_v58  ;;  %v1870_v58 = vand.u32 4294901760, %v1869_v46 }
  0x4e   : > { %2795 = vmatprep.subr.bf16.mxu1 %v3044_v3 }
  0x50   : > { %2845 = vmatpush3.bf16.msra.mxu0 %v3286_v16 }
  0x51   : > { %2846 = vmatprep.subr.bf16.mxu0 %v3044_v3  ;;  %2797 = vmatpush3.bf16.msra.mxu1 %v2796_v63 }
  0x52   : > { %2665 = vmatprep.subr.mxu1 %v3046_v12 }
  0x53   : > { %2588 = vmatmul.mubr.f32.vlgmr.msra.gmra.mrb[0].mxu0 %v316_v6  ;;  %v1336_v6 = vand.u32 4294901760, %v876_v4 }
  0x54   : > { %2848 = vmatpush3.bf16.msra.mxu0 %v2847_v62  ;;  %2622 = vmatprep.mubr.msk.f32.mxu0 %vm3045_vm0, %v3046_v12  ;;  %v1871_v62 = vsub.f32 %v1869_v46, %v1870_v58 }
  0x55   : > { %2849 = vmatprep.subr.bf16.mxu0 %v3044_v3  ;;  %2518 = vmatmul.mubr.f32.vlgmr.msra.gmra.mrb[0].mxu1 %v3250_v60  ;;  %v1413_v50 = vsub.f32 %v876_v4, %v1336_v6 }
  0x56   : > { %2667 = vmatprep.mubr.msk.f32.mxu1 %vm3045_vm0, %v3046_v12 }
  0x57   : > { %v1414_v17 = vand.u32 4294901760, %v1413_v50 }
  0x58   : > { %2851 = vmatpush3.bf16.msra.mxu0 %v2850_v10 }
  0x59   : > { %2852 = vmatprep.subr.bf16.mxu0 %v3044_v3  ;;  %v1415_v25 = vsub.f32 %v1413_v50, %v1414_v17 }
  0x5b   : > { %v1416_v30 = vand.u32 4294901760, %v1415_v25 }
  0x5c   : > { %2854 = vmatpush3.bf16.msra.mxu0 %v2853_v13  ;;  %v1872_v13 = vand.u32 4294901760, %v1871_v62 }
  0x5d   : > { %2855 = vmatprep.subr.bf16.mxu0 %v3044_v3 }
  0x60   : > { %2857 = vmatpush3.bf16.msra.mxu0 %v2856_v14 }
  0x61   : > { %2858 = vmatprep.subr.bf16.mxu0 %v3044_v3 }
  0x64   : > { %2860 = vmatpush3.bf16.msra.mxu0 %v2859_v15 }
  0x65   : > { %2861 = vmatprep.subr.bf16.mxu0 %v3044_v3 }
  0x68   : > { %2863 = vmatpush3.bf16.msra.mxu0 %v2862_v18 }
  0x69   : > { %2864 = vmatprep.subr.bf16.mxu0 %v3044_v3 }
  0x6c   : > { %2866 = vmatpush3.bf16.msra.mxu0 %v2865_v23 }
  0x6d   : > { %2867 = vmatprep.subr.bf16.mxu0 %v3044_v3 }
  0x70   : > { %2869 = vmatpush3.bf16.msra.mxu0 %v2868_v24 }
  0x71   : > { %2870 = vmatprep.subr.bf16.mxu0 %v3044_v3 }
  0x73   : > { %2623 = vmatmul.mubr.f32.vlgmr.msra.gmra.mrb[0].mxu0 %v3250_v60 }
  0x74   : > { %2872 = vmatpush3.bf16.msra.mxu0 %v3181_v29  ;;  %2657 = vmatprep.mubr.msk.f32.mxu0 %vm3045_vm0, %v3046_v12  ;;  %v882_v29 = vand.u32 4294901760, %v875_v28 }
  0x75   : > { %2873 = vmatprep.subr.bf16.mxu0 %v3044_v3 }
  0x76   : > { %v959_v31 = vsub.f32 %v875_v28, %v882_v29 }
  0x78   : > { %2875 = vmatpush3.bf16.msra.mxu0 %v3196_v36  ;;  %v960_v36 = vand.u32 4294901760, %v959_v31 }
  0x79   : > { %2876 = vmatprep.subr.bf16.mxu0 %v3044_v3 }
  0x7a   : > { %v961_v39 = vsub.f32 %v959_v31, %v960_v36 }
  0x7c   : > { %2878 = vmatpush3.bf16.msra.mxu0 %v3214_v44  ;;  %v962_v40 = vand.u32 4294901760, %v961_v39 }
  0x7d   : > { %2879 = vmatprep.subr.bf16.mxu0 %v3044_v3 }
  0x7e   : > { %2666 = vmatpush3.msra.mxu1 %v962_v40 }
  0x7f   : > { %2670 = vmatprep.subr.mxu1 %v3046_v12 }
  0x80   : > { %2881 = vmatpush3.bf16.msra.mxu0 %v3234_v52 }
  0x81   : > { %2882 = vmatprep.subr.bf16.mxu0 %v3044_v3 }
  0x84   : > { %2884 = vmatpush3.bf16.msra.mxu0 %v3247_v59 }
  0x85   : > { %2885 = vmatprep.subr.bf16.mxu0 %v3044_v3 }
  0x88   : > { %2887 = vmatpush3.bf16.msra.mxu0 %v3263_v2 }
  0x89   : > { %2888 = vmatprep.subr.bf16.mxu0 %v3044_v3 }
  0x8c   : > { %2890 = vmatpush3.bf16.msra.mxu0 %v3276_v8 }
  0x8d   : > { %2891 = vmatprep.subr.bf16.mxu0 %v3044_v3 }
  0x90   : > { %2893 = vmatpush3.bf16.msra.mxu0 %v3286_v16 }
  0x91   : > { %2660 = vmatprep.subr.mxu0 %v3046_v12 }
  0x93   : > { %2658 = vmatmul.mubr.f32.vlgmr.msra.gmra.mrb[0].mxu0 %v3250_v60 }
  0x94   : > { %2662 = vmatprep.mubr.msk.f32.mxu0 %vm3045_vm0, %v3046_v12  ;;  %2661 = vmatpush3.msra.mxu0 %v882_v29 }
 0x128   : > { %v471_v3 = vpop.f32.mrb[0].mxu1 }
 0x129   : > { %v2519_v44 = vpop.f32.mrb[1].mxu1 }
 0x166   : > { %v870_v47 = vpop.f32.mrb[0].mxu0 }
 0x167   : > { %v2894_v48 = vadd.f32 %v870_v47, %v471_v3  ;;  %v2659_v52 = vpop.f32.mrb[1].mxu0 }
 0x169   : > { %v874_v56 = vmul.f32 0.0625, %v2894_v48 }
 0x16b   : > { %v879_v57 = vsel %vm877_vm1, %v874_v56, 0 }
 0x16c   : > { %v947_v59 = vand.u32 4294901760, %v879_v57 }
 0x16e   : > { %v948_v60 = vsub.f32 %v879_v57, %v947_v59  ;;  %2668 = vmatmul.mubr.f32.vlgmr.msra.gmra.mrb[2].mxu1 %v947_v59 }
 0x16f   : > { %2671 = vmatpush3.msra.mxu1 %v959_v31  ;;  %2672 = vmatprep.mubr.msk.f32.mxu1 %vm3045_vm0, %v3046_v12 }
 0x170   : > { %v949_v0 = vand.u32 4294901760, %v948_v60  ;;  %2675 = vmatprep.subr.mxu1 %v3046_v12 }
 0x172   : > { %v950_v1 = vsub.f32 %v948_v60, %v949_v0 }
 0x174   : > { %v951_v2 = vand.u32 4294901760, %v950_v1 }
 0x176   : > { %2663 = vmatmul.mubr.f32.vlgmr.msra.gmra.mrb[2].mxu0 %v951_v2  ;;  %2673 = vmatmul.mubr.f32.vlgmr.msra.gmra.mrb[2].mxu1 %v948_v60 }
 0x177   : > { %2676 = vmatpush3.msra.mxu1 %v882_v29  ;;  %2677 = vmatprep.mubr.msk.f32.mxu1 %vm3045_vm0, %v3046_v12 }
 0x178   : > { %2680 = vmatprep.subr.mxu1 %v3046_v12 }
 0x17e   : > { %2678 = vmatmul.mubr.f32.vlgmr.msra.gmra.mrb[2].mxu1 %v949_v0 }
 0x17f   : > { %2681 = vmatpush3.msra.mxu1 %v960_v36  ;;  %2682 = vmatprep.mubr.msk.f32.mxu1 %vm3045_vm0, %v3046_v12 }
 0x180   : > { %2685 = vmatprep.subr.mxu1 %v3046_v12 }
 0x186   : > { %2683 = vmatmul.mubr.f32.vlgmr.msra.gmra.mrb[2].mxu1 %v947_v59 }
 0x187   : > { %2686 = vmatpush3.msra.mxu1 %v882_v29  ;;  %2687 = vmatprep.mubr.msk.f32.mxu1 %vm3045_vm0, %v3046_v12 }
 0x188   : > { %2690 = vmatprep.subr.mxu1 %v3046_v12 }
 0x18e   : > { %2688 = vmatmul.mubr.f32.vlgmr.msra.gmra.mrb[2].mxu1 %v947_v59 }
 0x18f   : > { %2692 = vmatprep.mubr.msk.f32.mxu1 %vm3045_vm0, %v3046_v12  ;;  %2691 = vmatpush3.msra.mxu1 %v1336_v6 }
 0x190   : > { %2695 = vmatprep.subr.mxu1 %v3046_v12 }
 0x249   : > { %v953_v7 = vpop.f32.mrb[2].mxu0 }
 0x24a   : > { %v2664_v8 = vpop.f32.mrb[3].mxu0 }
 0x261   : > { %v1323_v11 = vpop.f32.mrb[2].mxu1 }
 0x262   : > { %v2895_v16 = vadd.f32 %v1323_v11, %v953_v7  ;;  %v2689_v19 = vpop.f32.mrb[3].mxu1 }
 0x264   : > { %v1328_v20 = vmul.f32 0.70710677, %v2895_v16  ;;  %v1327_v38 = vmul.f32 0.5, %v2895_v16 }
 0x266   : > { %2974 = verf.f32 %v1328_v20 }
 0x270   : > { %v2975_v33 = vpop.eup %2974 }
 0x271   : > { %v1330_v49 = vadd.f32 1.0, %v2975_v33 }
 0x273   : > { %v1331_v55 = vmul.f32 %v1330_v49, %v1327_v38 }
 0x275   : > { %v1333_v9 = vsel %vm877_vm1, %v1331_v55, 0 }
 0x276   : > { %v1401_v21 = vand.u32 4294901760, %v1333_v9 }
 0x278   : > { %v1402_v22 = vsub.f32 %v1333_v9, %v1401_v21 }
 0x27a   : > { %v1403_v26 = vand.u32 4294901760, %v1402_v22 }
 0x27c   : > { %v1404_v27 = vsub.f32 %v1402_v22, %v1403_v26 }
 0x27e   : > { %v1405_v32 = vand.u32 4294901760, %v1404_v27 }
 0x280   : > { %2693 = vmatmul.mubr.f32.vlgmr.msra.gmra.mrb[4].mxu1 %v1405_v32 }
 0x281   : > { %2696 = vmatpush3.msra.mxu1 %v1416_v30  ;;  %2697 = vmatprep.mubr.msk.f32.mxu1 %vm3045_vm0, %v3046_v12 }
 0x282   : > { %2700 = vmatprep.subr.mxu1 %v3046_v12 }
 0x288   : > { %2698 = vmatmul.mubr.f32.vlgmr.msra.gmra.mrb[4].mxu1 %v1401_v21 }
 0x289   : > { %2701 = vmatpush3.msra.mxu1 %v1413_v50  ;;  %2702 = vmatprep.mubr.msk.f32.mxu1 %vm3045_vm0, %v3046_v12 }
 0x28a   : > { %2705 = vmatprep.subr.mxu1 %v3046_v12 }
 0x290   : > { %2703 = vmatmul.mubr.f32.vlgmr.msra.gmra.mrb[4].mxu1 %v1402_v22 }
 0x291   : > { %2706 = vmatpush3.msra.mxu1 %v1336_v6  ;;  %2707 = vmatprep.mubr.msk.f32.mxu1 %vm3045_vm0, %v3046_v12 }
 0x292   : > { %2710 = vmatprep.subr.mxu1 %v3046_v12 }
 0x298   : > { %2708 = vmatmul.mubr.f32.vlgmr.msra.gmra.mrb[4].mxu1 %v1403_v26 }
 0x299   : > { %2711 = vmatpush3.msra.mxu1 %v1414_v17  ;;  %2712 = vmatprep.mubr.msk.f32.mxu1 %vm3045_vm0, %v3046_v12 }
 0x29a   : > { %2715 = vmatprep.subr.mxu1 %v3046_v12 }
 0x2a0   : > { %2713 = vmatmul.mubr.f32.vlgmr.msra.gmra.mrb[4].mxu1 %v1401_v21 }
 0x2a1   : > { %2716 = vmatpush3.msra.mxu1 %v1336_v6  ;;  %2717 = vmatprep.mubr.msk.f32.mxu1 %vm3045_vm0, %v3046_v12 }
 0x2a2   : > { %2720 = vmatprep.subr.mxu1 %v3046_v12 }
 0x2a8   : > { %2718 = vmatmul.mubr.f32.vlgmr.msra.gmra.mrb[4].mxu1 %v1401_v21 }
 0x2a9   : > { %2722 = vmatprep.mubr.msk.f32.mxu1 %vm3045_vm0, %v3046_v12  ;;  %2721 = vmatpush3.msra.mxu1 %v1792_v35 }
 0x2aa   : > { %2725 = vmatprep.subr.mxu1 %v3046_v12 }
 0x37b   : > { %v1777_v37 = vpop.f32.mrb[4].mxu1 }
 0x37c   : > { %v2308_v41 = vmul.f32 -1.442695, %v1777_v37  ;;  %v2719_v42 = vpop.f32.mrb[5].mxu1 }
 0x37e   : > { %2976 = vpow2.f32 %v2308_v41 }
 0x388   : > { %v2977_v43 = vpop.eup %2976 }
 0x389   : > { %v1784_v45 = vadd.f32 1.0, %v2977_v43 }
 0x38b   : > { %2978 = vrcp.f32 %v1784_v45 }
 0x395   : > { %v2979_v51 = vpop.eup %2978 }
 0x396   : > { %v1789_v53 = vsel %vm877_vm1, %v2979_v51, 0 }
 0x397   : > { %v1857_v61 = vand.u32 4294901760, %v1789_v53 }
 0x399   : > { %v1858_v5 = vsub.f32 %v1789_v53, %v1857_v61 }
 0x39b   : > { %v1859_v63 = vand.u32 4294901760, %v1858_v5 }
 0x39d   : > { %v1860_v10 = vsub.f32 %v1858_v5, %v1859_v63 }
 0x39f   : > { %v1861_v14 = vand.u32 4294901760, %v1860_v10 }
 0x3a1   : > { %2723 = vmatmul.mubr.f32.vlgmr.msra.gmra.mrb[6].mxu1 %v1861_v14 }
 0x3a2   : > { %2726 = vmatpush3.msra.mxu1 %v1872_v13  ;;  %2727 = vmatprep.mubr.msk.f32.mxu1 %vm3045_vm0, %v3046_v12 }
 0x3a3   : > { %2730 = vmatprep.subr.mxu1 %v3046_v12 }
 0x3a9   : > { %2728 = vmatmul.mubr.f32.vlgmr.msra.gmra.mrb[6].mxu1 %v1857_v61 }
 0x3aa   : > { %2731 = vmatpush3.msra.mxu1 %v1869_v46  ;;  %2732 = vmatprep.mubr.msk.f32.mxu1 %vm3045_vm0, %v3046_v12 }
 0x3ab   : > { %2735 = vmatprep.subr.mxu1 %v3046_v12 }
 0x3b1   : > { %2733 = vmatmul.mubr.f32.vlgmr.msra.gmra.mrb[6].mxu1 %v1858_v5 }
 0x3b2   : > { %2736 = vmatpush3.msra.mxu1 %v1792_v35  ;;  %2737 = vmatprep.mubr.msk.f32.mxu1 %vm3045_vm0, %v3046_v12 }
 0x3b3   : > { %2740 = vmatprep.subr.mxu1 %v3046_v12 }
 0x3b9   : > { %2738 = vmatmul.mubr.f32.vlgmr.msra.gmra.mrb[6].mxu1 %v1859_v63 }
 0x3ba   : > { %2741 = vmatpush3.msra.mxu1 %v1870_v58  ;;  %2742 = vmatprep.mubr.msk.f32.mxu1 %vm3045_vm0, %v3046_v12 }
 0x3bb   : > { %2745 = vmatprep.subr.mxu1 %v3046_v12 }
 0x3c1   : > { %2743 = vmatmul.mubr.f32.vlgmr.msra.gmra.mrb[6].mxu1 %v1857_v61 }
 0x3c2   : > { %2746 = vmatpush3.msra.mxu1 %v1792_v35  ;;  %2747 = vmatprep.mubr.msk.f32.mxu1 %vm3045_vm0, %v3046_v12 }
 0x3c9   : > { %2748 = vmatmul.mubr.f32.vlgmr.msra.gmra.mrb[6].mxu1 %v1857_v61 }
 0x49c   : > { %v2233_v15 = vpop.f32.mrb[6].mxu1 }
 0x49d   : > { %v2237_v18 = vmul.f32 %v2233_v15, %v3237_v54  ;;  %v2749_v23 = vpop.f32.mrb[7].mxu1 }
 0x49f   : > { %2238 = vst [vmem:[%s212_s17] sm:$0x1] %v2237_v18 }
 0x4a0   : > { %2993 = shalt.err (!%p2990_p3)
}
 0x4a1   : > { %s2994_s10 = scalar_lea.hbm %s3506_s30, 16  ;;  %s2998_s13 = scalar_lea.hbm %s3553_s5, 32 }
 0x4a2   : > { %p2995_p4 = scmp.ne.s32.totalorder %s3506_s30, %s2994_s10  ;;  %p2999_p9 = scmp.lt.u32.totalorder %s3506_s30, %s3553_s5 }
 0x4a3   : > { %p3000_p10 = scmp.lt.u32.totalorder %s2998_s13, %s2994_s10  ;;  %p3002_p12 = scmp.lt.u32.totalorder %s2994_s10, %s3506_s30 }
 0x4a4   : > { %p2996_p7 = pnand %p2995_p4, %p3116_p5 }
 0x4a5   : > { %p3001_p11 = por %p3000_p10, %p2999_p9 }
 0x4a6   : > { %p2997_p8 = pneg %p2996_p7 }
 0x4a7   : > { %p3003_p13 = por %p3002_p12, %p3001_p11 }
 0x4a9   : > { %p3004_p0 = pnand %p3003_p13, %p2997_p8 }
 0x4ab   : > { %3007 = shalt.err (!%p3004_p0)
}
 0x4ac   : > { %2932 = dma.vmem_to_hbm [thread:$0]  (%p3116_p5), %s3508_s23, 16, %s3506_s30, %s2240_s6  }
 0x4ad PF: > { %p2938_p1 = scmp.ge.s32.totalorder %s3042_s21, 2  ;;  %s2264_s16 = sand.u32 1, %s3030_s18  }
 0x4ae   : > { %s2265_s17 = scalar_lea.sflag [#allocation3], %s2264_s16 }
 0x4af   : > { %p2935_p2 = pnand %p2938_p1, %p3120_p6 }
 0x4b1   : > { %3025 = dma.done.wait (!%p2935_p2), %s2265_s17, 16  }
 0x4b2   : > { %3027 = vsyncadd (!%p2935_p2), %s2265_s17, 4294967280  ;;  %p15_p3 = scmp.ge.s32.totalorder %s3103_s24, 4   ;;  %s3556_s18 = smov %s3034_s19 }
 0x4b3   : > { %s3557_s19 = smov %s3038_s20  ;;  %s3558_s20 = smov %s3114_s27 }
 0x4b4   : > { %s3559_s21 = smov %s3103_s24  ;;  %17 = sbr.rel (!%p15_p3) target bundleno = 3 (0x3), region = 75 }
 0x4bb   :  { %2269 = vsyncpa [#allocation3], 1 }
 0x4bc   :  { %2271 = vsyncpa [#allocation3 + $0x1], 1 }

</bundles_post_ra>
